<compile_context>
chip_gen: v6e
topology: v6e:2x2x1
jax: 0.10.0
libtpu: 0.0.40
codegen_flags: <defaults>
</compile_context>

<pallas_src>
import math
import functools
from dataclasses import dataclass

import jax
import jax.numpy as jnp
from jax.experimental import pallas as pl
from jax.experimental.pallas import tpu as pltpu


# ----------------------------- config ---------------------------------------
@dataclass
class NDLConfig:
    hidden_size: int = 32
    num_attention_heads: int = 4
    num_key_value_heads: int = 2
    max_position_embeddings: int = 64
    rope_theta: float = 10000.0
    attention_bias: bool = False        # nn.Linear(..., bias=False)
    attention_dropout: float = 0.0      # eval mode -> dropout is a no-op
    pretraining_tp: int = 1
    rope_scaling: object = None         # None -> plain NDLRotryEmbedding


# ----------------------------- fused Pallas kernel ----------------------------
def _fused_attn_kernel(x_ref, wqkv_ref, wo_ref, cos_ref, sin_ref, o_ref,
                       *, H, Hkv, D, scale):
    """One grid step == one batch row: QKV -> RoPE -> causal GQA attention -> O proj."""
    S = x_ref.shape[1]
    G = H // Hkv
    half = D // 2

    x = x_ref[0].astype(jnp.float32)                       # (S, HID)

    # --- single fused QKV projection (one MXU pass instead of three kernel launches)
    qkv = jnp.dot(x, wqkv_ref[...].astype(jnp.float32),
                  preferred_element_type=jnp.float32)      # (S, (H + 2*Hkv) * D)
    # TODO(synk): at real (large) shapes cast matmul operands to bf16 (f32 accumulate)
    # for full-rate v6e/v7x MXU; kept f32 here since inputs are f32 and shapes are tiny.

    cos = cos_ref[0].astype(jnp.float32)                   # (S, D)
    sin = sin_ref[0].astype(jnp.float32)                   # (S, D)

    def rope(t):                                           # (S, D) -> (S, D)
        # rotate_half(t) = concat(-t2, t1)
        rot = jnp.concatenate([-t[:, half:], t[:, :half]], axis=-1)
        return t * cos + rot * sin

    # --- causal mask generated in-kernel (additive, matches torch `+ causal_mask`)
    row = jax.lax.broadcasted_iota(jnp.int32, (S, S), 0)
    col = jax.lax.broadcasted_iota(jnp.int32, (S, S), 1)
    neg_mask = jnp.where(col <= row, 0.0, -1e9).astype(jnp.float32)   # (S, S)

    k_off = H * D
    v_off = (H + Hkv) * D

    head_outs = []
    for kvh in range(Hkv):                                 # static -> unrolled at trace time
        # RoPE on K computed ONCE per kv head (shared across its query-head group)
        k_h = rope(qkv[:, k_off + kvh * D: k_off + (kvh + 1) * D])    # (S, D)
        v_h = qkv[:, v_off + kvh * D: v_off + (kvh + 1) * D]          # (S, D)
        for g in range(G):
            h = kvh * G + g                                # GQA: query head h -> kv head h//G
            q_h = rope(qkv[:, h * D:(h + 1) * D])          # (S, D)
            s = jnp.dot(q_h, k_h.T, preferred_element_type=jnp.float32) * scale
            s = s + neg_mask
            # softmax in f32 (matches torch softmax(dtype=float32))
            m = jnp.max(s, axis=-1, keepdims=True)
            e = jnp.exp(s - m)
            p = e * pl.reciprocal(jnp.sum(e, axis=-1, keepdims=True), approx=True)
            # TODO(synk): attention dropout skipped (p=0.0 / eval mode in the reference).
            head_outs.append(jnp.dot(p, v_h, preferred_element_type=jnp.float32))  # (S, D)

    # pack heads back into lanes -> lane-dense (S, H*D); equals torch transpose(1,2).reshape
    attn = jnp.concatenate(head_outs, axis=-1)             # (S, HID)

    # --- output projection; single lane-dense store of the final [S, HID] block
    out = jnp.dot(attn, wo_ref[...].astype(jnp.float32),
                  preferred_element_type=jnp.float32)
    o_ref[0] = out.astype(o_ref.dtype)


# ----------------------------- module forward --------------------------------
def rope_cos_sin(position_ids, head_dim, theta, dtype):
    # NDLRotryEmbedding.forward
    inv_freq = 1.0 / (theta ** (jnp.arange(0, head_dim, 2, dtype=jnp.float32) / head_dim))
    freqs = position_ids[:, :, None].astype(jnp.float32) * inv_freq[None, None, :]  # [B,S,D/2]
    emb = jnp.concatenate([freqs, freqs], axis=-1)                                   # [B,S,D]
    return jnp.cos(emb).astype(dtype), jnp.sin(emb).astype(dtype)


def ndl_norm_attention_forward(params, cfg: NDLConfig, hidden_states, position_ids):
    """Fused forward. Causal mask is generated in-kernel (module has is_causal=True);
    RoPE cos/sin tables are computed once in the wrapper and applied inside the kernel."""
    B, S, HID = hidden_states.shape
    H = cfg.num_attention_heads
    Hkv = cfg.num_key_value_heads
    D = HID // H
    F = (H + 2 * Hkv) * D

    # fuse q/k/v weights into one [HID, F] matrix (store pre-fused in real deployments)
    wqkv = jnp.concatenate([params["wq"], params["wk"], params["wv"]], axis=1)

    cos, sin = rope_cos_sin(position_ids, D, cfg.rope_theta, hidden_states.dtype)

    kernel = functools.partial(_fused_attn_kernel, H=H, Hkv=Hkv, D=D,
                               scale=1.0 / math.sqrt(D))

    return pl.pallas_call(
        kernel,
        out_shape=jax.ShapeDtypeStruct((B, S, HID), hidden_states.dtype),
        grid_spec=pltpu.PrefetchScalarGridSpec(
            num_scalar_prefetch=0,
            grid=(B,),
            in_specs=[
                pl.BlockSpec((1, S, HID), lambda b: (b, 0, 0)),   # hidden_states
                pl.BlockSpec((HID, F), lambda b: (0, 0)),         # fused Wqkv
                pl.BlockSpec((HID, HID), lambda b: (0, 0)),       # Wo
                pl.BlockSpec((1, S, D), lambda b: (b, 0, 0)),     # cos
                pl.BlockSpec((1, S, D), lambda b: (b, 0, 0)),     # sin
            ],
            out_specs=pl.BlockSpec((1, S, HID), lambda b: (b, 0, 0)),
        ),
        compiler_params=pltpu.CompilerParams(
            dimension_semantics=("parallel",),   # batch rows shard across v7x TensorCores
        ),
    )(hidden_states, wqkv, params["wo"], cos, sin)


# ----------------------------- pure-JAX reference -----------------------------
def reference_forward(params, cfg, hidden_states, attention_mask, position_ids):
    B, S, HID = hidden_states.shape
    H, Hkv = cfg.num_attention_heads, cfg.num_key_value_heads
    D = HID // H
    x2d = hidden_states.reshape(B * S, HID)
    q = (x2d @ params["wq"]).reshape(B, S, H, D).transpose(0, 2, 1, 3)
    k = (x2d @ params["wk"]).reshape(B, S, Hkv, D).transpose(0, 2, 1, 3)
    v = (x2d @ params["wv"]).reshape(B, S, Hkv, D).transpose(0, 2, 1, 3)
    cos, sin = rope_cos_sin(position_ids, D, cfg.rope_theta, hidden_states.dtype)
    cos_ = cos[:, None]
    sin_ = sin[:, None]

    def rot_half(x):
        h = x.shape[-1] // 2
        return jnp.concatenate([-x[..., h:], x[..., :h]], axis=-1)

    q = q * cos_ + rot_half(q) * sin_
    k = k * cos_ + rot_half(k) * sin_
    k = jnp.repeat(k, H // Hkv, axis=1)
    v = jnp.repeat(v, H // Hkv, axis=1)
    w = jnp.einsum("bhqd,bhkd->bhqk", q, k) / math.sqrt(D) + attention_mask
    p = jax.nn.softmax(w.astype(jnp.float32), axis=-1).astype(q.dtype)
    o = jnp.einsum("bhqk,bhkd->bhqd", p, v)
    o = o.transpose(0, 2, 1, 3).reshape(B * S, HID)
    return (o @ params["wo"]).reshape(B, S, HID)


# ----------------------------- main -------------------------------------------
if __name__ == "__main__":
    cfg = NDLConfig()
    B, S = 2, 8
    HID = cfg.hidden_size
    H, Hkv = cfg.num_attention_heads, cfg.num_key_value_heads
    D = HID // H

    key = jax.random.PRNGKey(0)
    k0, k1, k2, k3, k4 = jax.random.split(key, 5)

    # deterministic synthetic parameters, stored as [in, out]
    params = {
        "wq": 0.05 * jax.random.normal(k0, (HID, H * D), jnp.float32),
        "wk": 0.05 * jax.random.normal(k1, (HID, Hkv * D), jnp.float32),
        "wv": 0.05 * jax.random.normal(k2, (HID, Hkv * D), jnp.float32),
        "wo": 0.05 * jax.random.normal(k3, (HID, HID), jnp.float32),
    }

    hidden_states = jax.random.normal(k4, (B, S, HID), jnp.float32)
    position_ids = jnp.broadcast_to(jnp.arange(S, dtype=jnp.int32)[None, :], (B, S))

    # additive causal mask [B, 1, S, S] for the reference (kernel builds it internally)
    causal = jnp.tril(jnp.ones((S, S), jnp.bool_))
    attention_mask = jnp.where(causal, 0.0, -1e9).astype(jnp.float32)[None, None]
    attention_mask = jnp.broadcast_to(attention_mask, (B, 1, S, S))

    out = ndl_norm_attention_forward(params, cfg, hidden_states, position_ids)
    out = jax.block_until_ready(out)

    ref = reference_forward(params, cfg, hidden_states, attention_mask, position_ids)
    assert out.shape == (B, S, HID)
    assert jnp.allclose(out, ref, rtol=1e-2, atol=1e-2), "mismatch vs JAX reference"

    print("KERNEL_OK")
</pallas_src>

<mosaic_0001>
module attributes {stable_mosaic.version = 11 : i64} {
  func.func @_fused_attn_kernel(%arg0: i32, %arg1: memref<1x8x32xf32, #tpu.memory_space<vmem>>, %arg2: memref<32x64xf32, #tpu.memory_space<vmem>>, %arg3: memref<32x32xf32, #tpu.memory_space<vmem>>, %arg4: memref<1x8x8xf32, #tpu.memory_space<vmem>>, %arg5: memref<1x8x8xf32, #tpu.memory_space<vmem>>, %arg6: memref<1x8x32xf32, #tpu.memory_space<vmem>>) attributes {dimension_semantics = [#tpu.dimension_semantics<parallel>], iteration_bounds = array<i64: 2>, scalar_prefetch = 0 : i64, scratch_operands = 0 : i64, tpu.core_type = #tpu.core_type<tc>, window_params = [{transform_indices = @transform_0, window_bounds = array<i64: 1, 8, 32>}, {pipeline_mode = #tpu.pipeline_mode<synchronous>, transform_indices = @transform_1, window_bounds = array<i64: 32, 64>}, {pipeline_mode = #tpu.pipeline_mode<synchronous>, transform_indices = @transform_2, window_bounds = array<i64: 32, 32>}, {transform_indices = @transform_3, window_bounds = array<i64: 1, 8, 8>}, {transform_indices = @transform_4, window_bounds = array<i64: 1, 8, 8>}, {transform_indices = @transform_5, window_bounds = array<i64: 1, 8, 32>}]} {
    %c0 = arith.constant 0 : index
    %c0_0 = arith.constant 0 : index
    %c0_1 = arith.constant 0 : index
    %0 = vector.load %arg1[%c0, %c0_0, %c0_1] : memref<1x8x32xf32, #tpu.memory_space<vmem>>, vector<1x8x32xf32>
    %1 = vector.shape_cast %0 : vector<1x8x32xf32> to vector<8x32xf32>
    %c0_2 = arith.constant 0 : index
    %c0_3 = arith.constant 0 : index
    %2 = vector.load %arg2[%c0_2, %c0_3] : memref<32x64xf32, #tpu.memory_space<vmem>>, vector<32x64xf32>
    %cst = arith.constant dense<0.000000e+00> : vector<8x64xf32>
    %3 = tpu.matmul %1, %2, %cst {dimension_numbers = #tpu.dot_dimension_numbers<[1], [0], [0], [1], [0, 0, 1, 1], [], []>} : vector<8x32xf32>, vector<32x64xf32>, vector<8x64xf32> -> vector<8x64xf32>
    %c0_4 = arith.constant 0 : index
    %c0_5 = arith.constant 0 : index
    %c0_6 = arith.constant 0 : index
    %4 = vector.load %arg4[%c0_4, %c0_5, %c0_6] : memref<1x8x8xf32, #tpu.memory_space<vmem>>, vector<1x8x8xf32>
    %5 = vector.shape_cast %4 : vector<1x8x8xf32> to vector<8x8xf32>
    %c0_7 = arith.constant 0 : index
    %c0_8 = arith.constant 0 : index
    %c0_9 = arith.constant 0 : index
    %6 = vector.load %arg5[%c0_7, %c0_8, %c0_9] : memref<1x8x8xf32, #tpu.memory_space<vmem>>, vector<1x8x8xf32>
    %7 = vector.shape_cast %6 : vector<1x8x8xf32> to vector<8x8xf32>
    %8 = tpu.iota {dimensions = array<i32: 0>} : vector<8x8xi32>
    %9 = tpu.iota {dimensions = array<i32: 1>} : vector<8x8xi32>
    %10 = arith.cmpi sle, %9, %8 : vector<8x8xi32>
    %cst_10 = arith.constant 0.000000e+00 : f32
    %cst_11 = arith.constant -1.000000e+09 : f32
    %11 = vector.broadcast %cst_10 : f32 to vector<8x8xf32>
    %12 = vector.broadcast %cst_11 : f32 to vector<8x8xf32>
    %13 = arith.select %10, %11, %12 : vector<8x8xi1>, vector<8x8xf32>
    %14 = vector.extract_strided_slice %3 {offsets = [0, 32], sizes = [8, 8], strides = [1, 1]} : vector<8x64xf32> to vector<8x8xf32>
    %15 = vector.extract_strided_slice %14 {offsets = [0, 4], sizes = [8, 4], strides = [1, 1]} : vector<8x8xf32> to vector<8x4xf32>
    %cst_12 = arith.constant 0.000000e+00 : f32
    %16 = vector.broadcast %cst_12 : f32 to vector<8x4xf32>
    %17 = arith.subf %16, %15 : vector<8x4xf32>
    %18 = vector.extract_strided_slice %14 {offsets = [0, 0], sizes = [8, 4], strides = [1, 1]} : vector<8x8xf32> to vector<8x4xf32>
    %19 = tpu.concatenate %17, %18 in 1 : vector<8x4xf32>, vector<8x4xf32> -> vector<8x8xf32>
    %20 = arith.mulf %14, %5 : vector<8x8xf32>
    %21 = arith.mulf %19, %7 : vector<8x8xf32>
    %22 = arith.addf %20, %21 : vector<8x8xf32>
    %23 = vector.extract_strided_slice %3 {offsets = [0, 48], sizes = [8, 8], strides = [1, 1]} : vector<8x64xf32> to vector<8x8xf32>
    %24 = vector.extract_strided_slice %3 {offsets = [0, 0], sizes = [8, 8], strides = [1, 1]} : vector<8x64xf32> to vector<8x8xf32>
    %25 = vector.extract_strided_slice %24 {offsets = [0, 4], sizes = [8, 4], strides = [1, 1]} : vector<8x8xf32> to vector<8x4xf32>
    %cst_13 = arith.constant 0.000000e+00 : f32
    %26 = vector.broadcast %cst_13 : f32 to vector<8x4xf32>
    %27 = arith.subf %26, %25 : vector<8x4xf32>
    %28 = vector.extract_strided_slice %24 {offsets = [0, 0], sizes = [8, 4], strides = [1, 1]} : vector<8x8xf32> to vector<8x4xf32>
    %29 = tpu.concatenate %27, %28 in 1 : vector<8x4xf32>, vector<8x4xf32> -> vector<8x8xf32>
    %30 = arith.mulf %24, %5 : vector<8x8xf32>
    %31 = arith.mulf %29, %7 : vector<8x8xf32>
    %32 = arith.addf %30, %31 : vector<8x8xf32>
    %33 = tpu.transpose %22, [1, 0] : vector<8x8xf32> -> vector<8x8xf32>
    %cst_14 = arith.constant dense<0.000000e+00> : vector<8x8xf32>
    %34 = tpu.matmul %32, %33, %cst_14 {dimension_numbers = #tpu.dot_dimension_numbers<[1], [0], [0], [1], [0, 0, 1, 1], [], []>} : vector<8x8xf32>, vector<8x8xf32>, vector<8x8xf32> -> vector<8x8xf32>
    %cst_15 = arith.constant 0.353553385 : f32
    %35 = vector.broadcast %cst_15 : f32 to vector<8x8xf32>
    %36 = arith.mulf %34, %35 : vector<8x8xf32>
    %37 = arith.addf %36, %13 : vector<8x8xf32>
    %cst_16 = arith.constant dense<0xFF800000> : vector<8xf32>
    %38 = vector.multi_reduction <maximumf>, %37, %cst_16 [1] : vector<8x8xf32> to vector<8xf32>
    %39 = vector.shape_cast %38 : vector<8xf32> to vector<8x1xf32>
    %40 = vector.broadcast %39 : vector<8x1xf32> to vector<8x8xf32>
    %41 = arith.subf %37, %40 : vector<8x8xf32>
    %42 = math.exp %41 : vector<8x8xf32>
    %cst_17 = arith.constant dense<0.000000e+00> : vector<8xf32>
    %43 = vector.multi_reduction <add>, %42, %cst_17 [1] : vector<8x8xf32> to vector<8xf32>
    %44 = vector.shape_cast %43 : vector<8xf32> to vector<8x1xf32>
    %45 = tpu.reciprocal %44 {approx = true} : vector<8x1xf32> -> vector<8x1xf32>
    %46 = vector.broadcast %45 : vector<8x1xf32> to vector<8x8xf32>
    %47 = arith.mulf %42, %46 : vector<8x8xf32>
    %cst_18 = arith.constant dense<0.000000e+00> : vector<8x8xf32>
    %48 = tpu.matmul %47, %23, %cst_18 {dimension_numbers = #tpu.dot_dimension_numbers<[1], [0], [0], [1], [0, 0, 1, 1], [], []>} : vector<8x8xf32>, vector<8x8xf32>, vector<8x8xf32> -> vector<8x8xf32>
    %49 = vector.extract_strided_slice %3 {offsets = [0, 8], sizes = [8, 8], strides = [1, 1]} : vector<8x64xf32> to vector<8x8xf32>
    %50 = vector.extract_strided_slice %49 {offsets = [0, 4], sizes = [8, 4], strides = [1, 1]} : vector<8x8xf32> to vector<8x4xf32>
    %cst_19 = arith.constant 0.000000e+00 : f32
    %51 = vector.broadcast %cst_19 : f32 to vector<8x4xf32>
    %52 = arith.subf %51, %50 : vector<8x4xf32>
    %53 = vector.extract_strided_slice %49 {offsets = [0, 0], sizes = [8, 4], strides = [1, 1]} : vector<8x8xf32> to vector<8x4xf32>
    %54 = tpu.concatenate %52, %53 in 1 : vector<8x4xf32>, vector<8x4xf32> -> vector<8x8xf32>
    %55 = arith.mulf %49, %5 : vector<8x8xf32>
    %56 = arith.mulf %54, %7 : vector<8x8xf32>
    %57 = arith.addf %55, %56 : vector<8x8xf32>
    %58 = tpu.transpose %22, [1, 0] : vector<8x8xf32> -> vector<8x8xf32>
    %cst_20 = arith.constant dense<0.000000e+00> : vector<8x8xf32>
    %59 = tpu.matmul %57, %58, %cst_20 {dimension_numbers = #tpu.dot_dimension_numbers<[1], [0], [0], [1], [0, 0, 1, 1], [], []>} : vector<8x8xf32>, vector<8x8xf32>, vector<8x8xf32> -> vector<8x8xf32>
    %cst_21 = arith.constant 0.353553385 : f32
    %60 = vector.broadcast %cst_21 : f32 to vector<8x8xf32>
    %61 = arith.mulf %59, %60 : vector<8x8xf32>
    %62 = arith.addf %61, %13 : vector<8x8xf32>
    %cst_22 = arith.constant dense<0xFF800000> : vector<8xf32>
    %63 = vector.multi_reduction <maximumf>, %62, %cst_22 [1] : vector<8x8xf32> to vector<8xf32>
    %64 = vector.shape_cast %63 : vector<8xf32> to vector<8x1xf32>
    %65 = vector.broadcast %64 : vector<8x1xf32> to vector<8x8xf32>
    %66 = arith.subf %62, %65 : vector<8x8xf32>
    %67 = math.exp %66 : vector<8x8xf32>
    %cst_23 = arith.constant dense<0.000000e+00> : vector<8xf32>
    %68 = vector.multi_reduction <add>, %67, %cst_23 [1] : vector<8x8xf32> to vector<8xf32>
    %69 = vector.shape_cast %68 : vector<8xf32> to vector<8x1xf32>
    %70 = tpu.reciprocal %69 {approx = true} : vector<8x1xf32> -> vector<8x1xf32>
    %71 = vector.broadcast %70 : vector<8x1xf32> to vector<8x8xf32>
    %72 = arith.mulf %67, %71 : vector<8x8xf32>
    %cst_24 = arith.constant dense<0.000000e+00> : vector<8x8xf32>
    %73 = tpu.matmul %72, %23, %cst_24 {dimension_numbers = #tpu.dot_dimension_numbers<[1], [0], [0], [1], [0, 0, 1, 1], [], []>} : vector<8x8xf32>, vector<8x8xf32>, vector<8x8xf32> -> vector<8x8xf32>
    %74 = vector.extract_strided_slice %3 {offsets = [0, 40], sizes = [8, 8], strides = [1, 1]} : vector<8x64xf32> to vector<8x8xf32>
    %75 = vector.extract_strided_slice %74 {offsets = [0, 4], sizes = [8, 4], strides = [1, 1]} : vector<8x8xf32> to vector<8x4xf32>
    %cst_25 = arith.constant 0.000000e+00 : f32
    %76 = vector.broadcast %cst_25 : f32 to vector<8x4xf32>
    %77 = arith.subf %76, %75 : vector<8x4xf32>
    %78 = vector.extract_strided_slice %74 {offsets = [0, 0], sizes = [8, 4], strides = [1, 1]} : vector<8x8xf32> to vector<8x4xf32>
    %79 = tpu.concatenate %77, %78 in 1 : vector<8x4xf32>, vector<8x4xf32> -> vector<8x8xf32>
    %80 = arith.mulf %74, %5 : vector<8x8xf32>
    %81 = arith.mulf %79, %7 : vector<8x8xf32>
    %82 = arith.addf %80, %81 : vector<8x8xf32>
    %83 = vector.extract_strided_slice %3 {offsets = [0, 56], sizes = [8, 8], strides = [1, 1]} : vector<8x64xf32> to vector<8x8xf32>
    %84 = vector.extract_strided_slice %3 {offsets = [0, 16], sizes = [8, 8], strides = [1, 1]} : vector<8x64xf32> to vector<8x8xf32>
    %85 = vector.extract_strided_slice %84 {offsets = [0, 4], sizes = [8, 4], strides = [1, 1]} : vector<8x8xf32> to vector<8x4xf32>
    %cst_26 = arith.constant 0.000000e+00 : f32
    %86 = vector.broadcast %cst_26 : f32 to vector<8x4xf32>
    %87 = arith.subf %86, %85 : vector<8x4xf32>
    %88 = vector.extract_strided_slice %84 {offsets = [0, 0], sizes = [8, 4], strides = [1, 1]} : vector<8x8xf32> to vector<8x4xf32>
    %89 = tpu.concatenate %87, %88 in 1 : vector<8x4xf32>, vector<8x4xf32> -> vector<8x8xf32>
    %90 = arith.mulf %84, %5 : vector<8x8xf32>
    %91 = arith.mulf %89, %7 : vector<8x8xf32>
    %92 = arith.addf %90, %91 : vector<8x8xf32>
    %93 = tpu.transpose %82, [1, 0] : vector<8x8xf32> -> vector<8x8xf32>
    %cst_27 = arith.constant dense<0.000000e+00> : vector<8x8xf32>
    %94 = tpu.matmul %92, %93, %cst_27 {dimension_numbers = #tpu.dot_dimension_numbers<[1], [0], [0], [1], [0, 0, 1, 1], [], []>} : vector<8x8xf32>, vector<8x8xf32>, vector<8x8xf32> -> vector<8x8xf32>
    %cst_28 = arith.constant 0.353553385 : f32
    %95 = vector.broadcast %cst_28 : f32 to vector<8x8xf32>
    %96 = arith.mulf %94, %95 : vector<8x8xf32>
    %97 = arith.addf %96, %13 : vector<8x8xf32>
    %cst_29 = arith.constant dense<0xFF800000> : vector<8xf32>
    %98 = vector.multi_reduction <maximumf>, %97, %cst_29 [1] : vector<8x8xf32> to vector<8xf32>
    %99 = vector.shape_cast %98 : vector<8xf32> to vector<8x1xf32>
    %100 = vector.broadcast %99 : vector<8x1xf32> to vector<8x8xf32>
    %101 = arith.subf %97, %100 : vector<8x8xf32>
    %102 = math.exp %101 : vector<8x8xf32>
    %cst_30 = arith.constant dense<0.000000e+00> : vector<8xf32>
    %103 = vector.multi_reduction <add>, %102, %cst_30 [1] : vector<8x8xf32> to vector<8xf32>
    %104 = vector.shape_cast %103 : vector<8xf32> to vector<8x1xf32>
    %105 = tpu.reciprocal %104 {approx = true} : vector<8x1xf32> -> vector<8x1xf32>
    %106 = vector.broadcast %105 : vector<8x1xf32> to vector<8x8xf32>
    %107 = arith.mulf %102, %106 : vector<8x8xf32>
    %cst_31 = arith.constant dense<0.000000e+00> : vector<8x8xf32>
    %108 = tpu.matmul %107, %83, %cst_31 {dimension_numbers = #tpu.dot_dimension_numbers<[1], [0], [0], [1], [0, 0, 1, 1], [], []>} : vector<8x8xf32>, vector<8x8xf32>, vector<8x8xf32> -> vector<8x8xf32>
    %109 = vector.extract_strided_slice %3 {offsets = [0, 24], sizes = [8, 8], strides = [1, 1]} : vector<8x64xf32> to vector<8x8xf32>
    %110 = vector.extract_strided_slice %109 {offsets = [0, 4], sizes = [8, 4], strides = [1, 1]} : vector<8x8xf32> to vector<8x4xf32>
    %cst_32 = arith.constant 0.000000e+00 : f32
    %111 = vector.broadcast %cst_32 : f32 to vector<8x4xf32>
    %112 = arith.subf %111, %110 : vector<8x4xf32>
    %113 = vector.extract_strided_slice %109 {offsets = [0, 0], sizes = [8, 4], strides = [1, 1]} : vector<8x8xf32> to vector<8x4xf32>
    %114 = tpu.concatenate %112, %113 in 1 : vector<8x4xf32>, vector<8x4xf32> -> vector<8x8xf32>
    %115 = arith.mulf %109, %5 : vector<8x8xf32>
    %116 = arith.mulf %114, %7 : vector<8x8xf32>
    %117 = arith.addf %115, %116 : vector<8x8xf32>
    %118 = tpu.transpose %82, [1, 0] : vector<8x8xf32> -> vector<8x8xf32>
    %cst_33 = arith.constant dense<0.000000e+00> : vector<8x8xf32>
    %119 = tpu.matmul %117, %118, %cst_33 {dimension_numbers = #tpu.dot_dimension_numbers<[1], [0], [0], [1], [0, 0, 1, 1], [], []>} : vector<8x8xf32>, vector<8x8xf32>, vector<8x8xf32> -> vector<8x8xf32>
    %cst_34 = arith.constant 0.353553385 : f32
    %120 = vector.broadcast %cst_34 : f32 to vector<8x8xf32>
    %121 = arith.mulf %119, %120 : vector<8x8xf32>
    %122 = arith.addf %121, %13 : vector<8x8xf32>
    %cst_35 = arith.constant dense<0xFF800000> : vector<8xf32>
    %123 = vector.multi_reduction <maximumf>, %122, %cst_35 [1] : vector<8x8xf32> to vector<8xf32>
    %124 = vector.shape_cast %123 : vector<8xf32> to vector<8x1xf32>
    %125 = vector.broadcast %124 : vector<8x1xf32> to vector<8x8xf32>
    %126 = arith.subf %122, %125 : vector<8x8xf32>
    %127 = math.exp %126 : vector<8x8xf32>
    %cst_36 = arith.constant dense<0.000000e+00> : vector<8xf32>
    %128 = vector.multi_reduction <add>, %127, %cst_36 [1] : vector<8x8xf32> to vector<8xf32>
    %129 = vector.shape_cast %128 : vector<8xf32> to vector<8x1xf32>
    %130 = tpu.reciprocal %129 {approx = true} : vector<8x1xf32> -> vector<8x1xf32>
    %131 = vector.broadcast %130 : vector<8x1xf32> to vector<8x8xf32>
    %132 = arith.mulf %127, %131 : vector<8x8xf32>
    %cst_37 = arith.constant dense<0.000000e+00> : vector<8x8xf32>
    %133 = tpu.matmul %132, %83, %cst_37 {dimension_numbers = #tpu.dot_dimension_numbers<[1], [0], [0], [1], [0, 0, 1, 1], [], []>} : vector<8x8xf32>, vector<8x8xf32>, vector<8x8xf32> -> vector<8x8xf32>
    %134 = tpu.concatenate %48, %73, %108, %133 in 1 : vector<8x8xf32>, vector<8x8xf32>, vector<8x8xf32>, vector<8x8xf32> -> vector<8x32xf32>
    %c0_38 = arith.constant 0 : index
    %c0_39 = arith.constant 0 : index
    %135 = vector.load %arg3[%c0_38, %c0_39] : memref<32x32xf32, #tpu.memory_space<vmem>>, vector<32x32xf32>
    %cst_40 = arith.constant dense<0.000000e+00> : vector<8x32xf32>
    %136 = tpu.matmul %134, %135, %cst_40 {dimension_numbers = #tpu.dot_dimension_numbers<[1], [0], [0], [1], [0, 0, 1, 1], [], []>} : vector<8x32xf32>, vector<32x32xf32>, vector<8x32xf32> -> vector<8x32xf32>
    %c0_41 = arith.constant 0 : index
    %c0_42 = arith.constant 0 : index
    %c0_43 = arith.constant 0 : index
    %137 = vector.load %arg6[%c0_41, %c0_42, %c0_43] : memref<1x8x32xf32, #tpu.memory_space<vmem>>, vector<1x8x32xf32>
    %138 = vector.shape_cast %137 : vector<1x8x32xf32> to vector<8x32xf32>
    %139 = vector.shape_cast %136 : vector<8x32xf32> to vector<1x8x32xf32>
    tpu.vector_store %arg6[%c0_41, %c0_42, %c0_43], %139 {strides = array<i32>} : memref<1x8x32xf32, #tpu.memory_space<vmem>>, vector<1x8x32xf32>,
    return
  }
  func.func @transform_0(%arg0: i32) -> (i32, i32, i32) {
    %c0_i32 = arith.constant 0 : i32
    %c0_i32_0 = arith.constant 0 : i32
    %c0_i32_1 = arith.constant 0 : i32
    return %arg0, %c0_i32, %c0_i32_0 : i32, i32, i32
  }
  func.func @transform_1(%arg0: i32) -> (i32, i32) {
    %c0_i32 = arith.constant 0 : i32
    %c0_i32_0 = arith.constant 0 : i32
    %c0_i32_1 = arith.constant 0 : i32
    return %c0_i32, %c0_i32_0 : i32, i32
  }
  func.func @transform_2(%arg0: i32) -> (i32, i32) {
    %c0_i32 = arith.constant 0 : i32
    %c0_i32_0 = arith.constant 0 : i32
    %c0_i32_1 = arith.constant 0 : i32
    return %c0_i32, %c0_i32_0 : i32, i32
  }
  func.func @transform_3(%arg0: i32) -> (i32, i32, i32) {
    %c0_i32 = arith.constant 0 : i32
    %c0_i32_0 = arith.constant 0 : i32
    %c0_i32_1 = arith.constant 0 : i32
    return %arg0, %c0_i32, %c0_i32_0 : i32, i32, i32
  }
  func.func @transform_4(%arg0: i32) -> (i32, i32, i32) {
    %c0_i32 = arith.constant 0 : i32
    %c0_i32_0 = arith.constant 0 : i32
    %c0_i32_1 = arith.constant 0 : i32
    return %arg0, %c0_i32, %c0_i32_0 : i32, i32, i32
  }
  func.func @transform_5(%arg0: i32) -> (i32, i32, i32) {
    %c0_i32 = arith.constant 0 : i32
    %c0_i32_0 = arith.constant 0 : i32
    %c0_i32_1 = arith.constant 0 : i32
    return %arg0, %c0_i32, %c0_i32_0 : i32, i32, i32
  }
}

</mosaic_0001>

<bundles_post_ra>
// kernel: tpu_custom_call.1
= control target key start
LH: loop header
LB: loop body
LE: loop exit
PB: predicated region body
PF: predicated region fallthrough
CT: control target
= control target key end

     0   :  { %s2310_s0 = inlined_call_operand.hbm [shape: f32[2,8,32], index: 0, kind: input, shape index: {}]   ;;  %s2311_s1 = inlined_call_operand.hbm [shape: f32[32,64], index: 1, kind: input, shape index: {}]   ;;  %s2312_s2 = inlined_call_operand.hbm [shape: f32[32,32], index: 2, kind: input, shape index: {}]   ;;  %s2313_s3 = inlined_call_operand.hbm [shape: f32[2,8,8], index: 3, kind: input, shape index: {}]   ;;  %s2314_s4 = inlined_call_operand.hbm [shape: f32[2,8,8], index: 4, kind: input, shape index: {}]   ;;  %s2315_s5 = inlined_call_operand.hbm [shape: f32[2,8,32], index: 5, kind: output, shape index: {}]  }
   0x1   :  { %2329 = sst [smem:[#allocation19_spill]] %s2310_s0 }
   0x2   :  { %2330 = sst [smem:[#allocation20_spill]] %s2311_s1 }
   0x3   :  { %10 = vsyncpa [#allocation3], 0 }
   0x4   :  { %12 = vsyncpa [#allocation3 + $0x1], 0 }
   0x5   :  { %13 = vsyncpa [#allocation6], 0 }
   0x6   :  { %14 = vsyncpa [#allocation9], 0 }
   0x7   :  { %16 = vsyncpa [#allocation9 + $0x1], 0 }
   0x8   :  { %17 = vsyncpa [#allocation4], 0 }
   0x9   :  { %19 = vsyncpa [#allocation4 + $0x1], 0  ;;  %s1938_s18 = smov 0   ;;  %s1940_s19 = smov 0  }
   0xa   :  { %s1942_s20 = smov 0   ;;  %s1944_s21 = smov 0  }
   0xb LB: > { %2331 = sst [smem:[#allocation16_spill]] %s1876_s21  ;;  %s1959_s22 = sadd.s32 4294967295, %s1876_s21   ;;  %s1876_s21 = sphi %s1944_s21, %s2356_s21   ;;  %s1872_s20 = sphi %s1942_s20, %s2360_s20   ;;  %s1868_s19 = sphi %s1940_s19, %s2359_s19   ;;  %s1864_s18 = sphi %s1938_s18, %s2358_s18  }
   0xc   : > { %s1427_s23 = sadd.s32 4294967294, %s1876_s21   ;;  %p45_p0 = scmp.ne.s32.totalorder %s1868_s19, %s1864_s18 }
   0xd   : > { %p2319_p1 = scmp.eq.s32.totalorder %s1959_s22, 0  ;;  %p163_p2 = scmp.eq.s32.totalorder %s1959_s22, 1 }
   0xe   : > { %p169_p3 = scmp.eq.s32.totalorder %s1427_s23, 1  ;;  %p1428_p5 = scmp.ge.s32.totalorder %s1876_s21, 1 }
   0xf   : > { %p1968_p4 = por %p2319_p1, %p45_p0  ;;  %p176_p7 = scmp.lt.s32.totalorder %s1876_s21, 3 }
  0x10   : > { %p1973_p6 = por %p169_p3, %p45_p0  ;;  %s1878_s27 = smov [#allocation5]  }
  0x11   : > { %s2332_s24 = scalar_select %p1968_p4, 1, 0 }
  0x12   : > { %s2333_s25 = scalar_select %p1973_p6, 1, 0 }
  0x13   : > { %p1978_p8 = pnand %p1428_p5, %p176_p7  ;;  %s188_s28 = sshll.u32 %s1878_s27, 4  ;;  %s189_s28 = int_to_ptr.vmem [resolvable:$true] %s188_s28 }
  0x14   : > { %s1992_s30 = sadd.s32 1, %s1876_s21   ;;  %s32_s6 = sadd.s32 1, %s1872_s20 }
  0x15   : > { %s2334_s26 = scalar_select %p1978_p8, 1, 0 }
  0x16   : > { %p1567_p9 = pneg %p1978_p8  ;;  %2336 = sst [smem:[#allocation17_spill]] %s1992_s30 }
  0x17   : > { %s29_s7 = ssub.s32 %s1876_s21, %s1992_s30  ;;  %s1679_s8 = scalar_lea.vmem %s189_s28, 512 }
  0x18   : > { %p1987_p11 = pnand %p1567_p9, %p2319_p1  ;;  %p1680_p13 = scmp.ne.s32.totalorder %s189_s28, %s1679_s8 }
  0x19   : > { %p1687_p5 = scmp.lt.s32.totalorder %s189_s28, %s189_s28  ;;  %p1688_p7 = scmp.lt.s32.totalorder %s1679_s8, %s1679_s8 }
  0x1a   : > { %s2335_s29 = scalar_select %p1987_p11, 1, 0 }
  0x1b   : > { %p2320_p12 = pneg %p1987_p11  ;;  %p1689_p9 = por %p1688_p7, %p1687_p5 }
  0x1d   : > { %p1682_p0 = pnand %p1680_p13, %p2320_p12 }
  0x1f   : > { %p1683_p3 = pneg %p1682_p0 }
  0x21   : > { %p1690_p10 = pnand %p1689_p9, %p1683_p3 }
  0x23   : > { %1693 = shalt.err (!%p1690_p10)
}
  0x24   : > { %s2317_s9 = smov 128   ;;  %s2318_s10 = smov 8  }
  0x25   : > { %s2337_s1 = sld [smem:[#allocation20_spill]]  ;;  %p30_p10 = scmp.eq.s32.totalorder %s29_s7, 0 }
  0x26   : > { %p39_p13 = scmp.ne.s32.totalorder %s1872_s20, %s1868_s19  ;;  %p40_p0 = scmp.eq.s32.totalorder %s1876_s21, 0 }
  0x27   : > { %p1590_p3 = scmp.lt.s32.totalorder %s1876_s21, 2  ;;  %s2316_s15 = sand.u32 1, %s1872_s20  }
  0x28   : > { %s2015_s13 = scalar_select %p30_p10, %s1872_s20, %s32_s6  }
  0x29   : > { %p41_p5 = por %p40_p0, %p39_p13  ;;  %p2019_p7 = por %p163_p2, %p39_p13 }
  0x2a   : > { %2338 = sst [smem:[#allocation18_spill]] %s2015_s13  ;;  %s2025_s16 = sshll.u32 %s1876_s21, 7 }
  0x2b   : > { %1570 = dma.hbm_to_vmem [thread:$0]  (!%p1987_p11), %s2337_s1, 512, %s189_s28, [#allocation6], %s2317_s9, %s2317_s9, %s2318_s10  }
  0x2c   : > { %s2339_s14 = scalar_select %p2019_p7, 1, 0 }
  0x2d   : > { %s2029_s17 = sshll.u32 %s2316_s15, 3  ;;  %p2031_p9 = pnand %p1590_p3, %p41_p5 }
  0x2e   : > { %s233_s27 = sand.u32 1, %s1876_s21   ;;  %s2040_s7 = scalar_lea.hbm %s2313_s3, %s2025_s16 }
  0x2f   : > { %s237_s8 = scalar_lea.vmem [#allocation8], %s2029_s17  ;;  %s2043_s12 = scalar_lea.sflag [#allocation9], %s233_s27 }
  0x30   : > { %s244_s11 = sshll.u32 %s237_s8, 4  ;;  %s1694_s15 = scalar_lea.hbm %s2040_s7, 128  ;;  %s245_s11 = int_to_ptr.vmem [resolvable:$true] %s244_s11 }
  0x31   : > { %p1695_p2 = scmp.ne.s32.totalorder %s2040_s7, %s1694_s15  ;;  %p2049_p10 = pneg %p2031_p9 }
  0x32   : > { %s1699_s10 = scalar_lea.hbm %s2313_s3, 256  ;;  %p1700_p3 = scmp.lt.s32.totalorder %s2040_s7, %s2313_s3 }
  0x33   : > { %p1697_p13 = pnand %p2049_p10, %p1695_p2  ;;  %p1701_p5 = scmp.lt.s32.totalorder %s1699_s10, %s1694_s15 }
  0x35   : > { %p1698_p0 = pneg %p1697_p13  ;;  %p1702_p1 = por %p1701_p5, %p1700_p3 }
  0x37   : > { %p1703_p12 = pnand %p1702_p1, %p1698_p0 }
  0x39   : > { %1706 = shalt.err (!%p1703_p12)
}
  0x3a   : > { %s1707_s27 = scalar_lea.vmem %s245_s11, 128  ;;  %s1881_s13 = smov [#allocation8]  }
  0x3b   : > { %p1708_p6 = scmp.ne.s32.totalorder %s245_s11, %s1707_s27  ;;  %s1712_s30 = sshll.u32 %s1881_s13, 4  ;;  %s1713_s30 = int_to_ptr.vmem [resolvable:$false] %s1712_s30 }
  0x3c   : > { %s1714_s21 = scalar_lea.vmem %s1713_s30, 256  ;;  %p1715_p2 = scmp.lt.s32.totalorder %s245_s11, %s1713_s30 }
  0x3d   : > { %p1710_p7 = pnand %p1708_p6, %p2049_p10  ;;  %p1716_p13 = scmp.lt.s32.totalorder %s1714_s21, %s1707_s27 }
  0x3f   : > { %p1711_p4 = pneg %p1710_p7  ;;  %p1717_p8 = por %p1716_p13, %p1715_p2 }
  0x41   : > { %p1718_p11 = pnand %p1717_p8, %p1711_p4 }
  0x43   : > { %1721 = shalt.err (!%p1718_p11)
}
  0x44   : > { %1580 = dma.hbm_to_vmem [thread:$0]  (!%p2031_p9), %s2040_s7, 128, %s245_s11, %s2043_s12  }
  0x45   : > { %s1882_s1 = smov [#allocation7]   ;;  %p2342_p6 = scmp.ne.s32.totalorder %s2335_s29, 0 }
  0x46   : > { %s201_s10 = sshll.u32 %s1882_s1, 4  ;;  %s202_s10 = int_to_ptr.vmem [resolvable:$true] %s201_s10 }
  0x47   : > { %s1733_s15 = scalar_lea.vmem %s202_s10, 512  ;;  %p2343_p12 = pneg %p2342_p6 }
  0x48   : > { %p1734_p1 = scmp.ne.s32.totalorder %s202_s10, %s1733_s15  ;;  %p1741_p3 = scmp.lt.s32.totalorder %s202_s10, %s202_s10 }
  0x49   : > { %p1742_p5 = scmp.lt.s32.totalorder %s1733_s15, %s1733_s15 }
  0x4a   : > { %p1736_p7 = pnand %p1734_p1, %p2343_p12 }
  0x4b   : > { %p1743_p2 = por %p1742_p5, %p1741_p3 }
  0x4c   : > { %p1737_p0 = pneg %p1736_p7 }
  0x4e   : > { %p1744_p4 = pnand %p1743_p2, %p1737_p0 }
  0x50   : > { %1747 = shalt.err (!%p1744_p4)
}
  0x51   : > { %s2344_s21 = smov 8   ;;  %s2345_s30 = smov 128  }
  0x52   : > { %1573 = dma.hbm_to_vmem [thread:$0]  (!%p2342_p6), %s2312_s2, 512, %s202_s10, [#allocation6], %s2345_s30, %s2345_s30, %s2344_s21  }
  0x53   : > { %s2346_s0 = sld [smem:[#allocation19_spill]]  ;;  %s219_s29 = scalar_lea.vmem [#allocation2], %s2029_s17 }
  0x54   : > { %s226_s8 = sshll.u32 %s219_s29, 4  ;;  %s2347_s27 = sand.u32 1, %s1872_s20   ;;  %s227_s8 = int_to_ptr.vmem [resolvable:$true] %s226_s8 }
  0x55   : > { %s216_s1 = scalar_lea.sflag [#allocation3], %s2347_s27 }
  0x59   : > { %s2083_s6 = scalar_lea.hbm %s2346_s0, %s2025_s16  ;;  %s1753_s21 = scalar_lea.hbm %s2346_s0, 256 }
  0x5a   : > { %s1748_s15 = scalar_lea.hbm %s2083_s6, 128  ;;  %p1754_p1 = scmp.lt.s32.totalorder %s2083_s6, %s2346_s0 }
  0x5b   : > { %p1749_p8 = scmp.ne.s32.totalorder %s2083_s6, %s1748_s15  ;;  %p1755_p6 = scmp.lt.s32.totalorder %s1753_s21, %s1748_s15 }
  0x5d   : > { %p1751_p11 = pnand %p1749_p8, %p2049_p10  ;;  %p1756_p12 = por %p1755_p6, %p1754_p1 }
  0x5f   : > { %p1752_p13 = pneg %p1751_p11 }
  0x61   : > { %p1757_p7 = pnand %p1756_p12, %p1752_p13 }
  0x63   : > { %1760 = shalt.err (!%p1757_p7)
}
  0x64   : > { %s1761_s11 = scalar_lea.vmem %s227_s8, 128  ;;  %s1883_s28 = smov [#allocation2]  }
  0x65   : > { %p1762_p0 = scmp.ne.s32.totalorder %s227_s8, %s1761_s11  ;;  %s1766_s29 = sshll.u32 %s1883_s28, 4  ;;  %s1767_s29 = int_to_ptr.vmem [resolvable:$false] %s1766_s29 }
  0x66   : > { %s1768_s27 = scalar_lea.vmem %s1767_s29, 256  ;;  %p1769_p2 = scmp.lt.s32.totalorder %s227_s8, %s1767_s29 }
  0x67   : > { %p1764_p3 = pnand %p1762_p0, %p2049_p10  ;;  %p1770_p4 = scmp.lt.s32.totalorder %s1768_s27, %s1761_s11 }
  0x69   : > { %p1765_p5 = pneg %p1764_p3  ;;  %p1771_p8 = por %p1770_p4, %p1769_p2 }
  0x6b   : > { %p1772_p11 = pnand %p1771_p8, %p1765_p5 }
  0x6d   : > { %1775 = shalt.err (!%p1772_p11)
}
  0x6e   : > { %1577 = dma.hbm_to_vmem [thread:$0]  (!%p2031_p9), %s2083_s6, 128, %s227_s8, %s216_s1  }
  0x6f   : > { %s260_s10 = scalar_lea.hbm %s2314_s4, %s2025_s16  ;;  %s255_s21 = scalar_lea.vmem [#allocation10], %s2029_s17 }
  0x70   : > { %s262_s30 = sshll.u32 %s255_s21, 4  ;;  %s1776_s7 = scalar_lea.hbm %s260_s10, 128  ;;  %s263_s30 = int_to_ptr.vmem [resolvable:$true] %s262_s30 }
  0x71   : > { %p1777_p13 = scmp.ne.s32.totalorder %s260_s10, %s1776_s7  ;;  %s1781_s29 = scalar_lea.hbm %s2314_s4, 256 }
  0x72   : > { %p1782_p12 = scmp.lt.s32.totalorder %s260_s10, %s2314_s4  ;;  %p1783_p7 = scmp.lt.s32.totalorder %s1781_s29, %s1776_s7 }
  0x73   : > { %p1779_p1 = pnand %p1777_p13, %p2049_p10 }
  0x74   : > { %p1784_p0 = por %p1783_p7, %p1782_p12 }
  0x75   : > { %p1780_p6 = pneg %p1779_p1 }
  0x77   : > { %p1785_p3 = pnand %p1784_p0, %p1780_p6 }
  0x79   : > { %1788 = shalt.err (!%p1785_p3)
}
  0x7a   : > { %s1789_s16 = scalar_lea.vmem %s263_s30, 128  ;;  %s1884_s17 = smov [#allocation10]  }
  0x7b   : > { %p1790_p5 = scmp.ne.s32.totalorder %s263_s30, %s1789_s16  ;;  %s1794_s6 = sshll.u32 %s1884_s17, 4  ;;  %s1795_s6 = int_to_ptr.vmem [resolvable:$false] %s1794_s6 }
  0x7c   : > { %s1796_s8 = scalar_lea.vmem %s1795_s6, 256  ;;  %p1797_p8 = scmp.lt.s32.totalorder %s263_s30, %s1795_s6 }
  0x7d   : > { %p1792_p2 = pnand %p1790_p5, %p2049_p10  ;;  %p1798_p11 = scmp.lt.s32.totalorder %s1796_s8, %s1789_s16 }
  0x7f   : > { %p1793_p4 = pneg %p1792_p2  ;;  %p1799_p13 = por %p1798_p11, %p1797_p8 }
  0x81   : > { %p1800_p1 = pnand %p1799_p13, %p1793_p4 }
  0x83   : > { %1803 = shalt.err (!%p1800_p1)
}
  0x84   : > { %1583 = dma.hbm_to_vmem [thread:$0]  (!%p2031_p9), %s260_s10, 128, %s263_s30, %s2043_s12  }
  0x85   : > { %p2348_p6 = scmp.ne.s32.totalorder %s2334_s26, 0 }
  0x86   : > { %s2125_s0 = sand.u32 (!%p2348_p6), 1, %s1868_s19   ;;  %p2349_p10 = scmp.ne.s32.totalorder (!%p2348_p6), %s2332_s24, 0 }
  0x87   : > { %271 = sbr.rel (%p2348_p6) target bundleno = 2255 (0x8cf), region = 40  ;;  %s2128_s9 = sshll.u32 (!%p2348_p6), %s2125_s0, 3 }
  0x88   : > { %s274_s1 = scalar_lea.sflag (!%p2348_p6), [#allocation3], %s2125_s0  ;;  %s277_s15 = scalar_lea.vmem (!%p2348_p6), [#allocation2], %s2128_s9 }
  0x8c   : > { %1847 = dma.done.wait (%p2349_p10), %s274_s1, 128  }
  0x8d   : > { %1849 = vsyncadd (%p2349_p10), %s274_s1, 4294967168  ;;  %p2350_p9 = scmp.eq.s32.totalorder %s1959_s22, 0 }
  0x8f   : > { %1851 = dma.done.wait (%p2350_p9), [#allocation6], 1024   ;;  %p2351_p12 = pmov %p2350_p9 }
  0x90   : > { %s290_s26 = sand.u32 1, %s1959_s22   ;;  %s294_s12 = scalar_lea.vmem [#allocation8], %s2128_s9 }
  0x91   : > { %1853 = vsyncadd (%p2351_p12), [#allocation6], 4294966272  ;;  %s291_s23 = scalar_lea.sflag [#allocation9], %s290_s26 }
  0x92   : > { %1855 = dma.done.wait (%p2349_p10), %s291_s23, 256  }
  0x93   : > { %1857 = vsyncadd (%p2349_p10), %s291_s23, 4294967040  ;;  %v1885_v0 = vmov 0.0   ;;  %vm1886_vm0 = vmmov 0   ;;  %v344_v1 = vld [vmem:[#allocation5 + $0x18] sm:$0xff]  ;;  %v343_v2 = vld [vmem:[#allocation5 + $0x10] sm:$0xff]  ;;  %s1887_s24 = smov 32   ;;  %v421_v53 = vlaneseq }
  0x94   : > { %1489 = vmatprep.subr.mxu0 %v1885_v0  ;;  %1497 = vmatprep.mubr.msk.f32.mxu0 %vm1886_vm0, %v1885_v0  ;;  %v2152_v3 = vld [vmem:[%s294_s12] sm:$0xff]  ;;  %v340_v6 = vld [vmem:[%s277_s15] sm:$0xff]  ;;  %vm345_vm1 = vcmask 261120   ;;  %s1888_s13 = smov 92   ;;  %s1889_s10 = smov 100   ;;  %vm436_vm2 = vcmask 31744  }
  0x95   : > { %1500 = vmatprep.subr.mxu1 %v1885_v0  ;;  %1502 = vmatprep.mubr.msk.f32.mxu1 %vm1886_vm0, %v1885_v0  ;;  %v342_v4 = vld [vmem:[#allocation5 + $0x8] sm:$0xff]  ;;  %v341_v5 = vld [vmem:[#allocation5] sm:$0xff]  ;;  %s1890_s21 = smov 124   ;;  %s303_s30 = scalar_lea.vmem [#allocation10], %s2128_s9  ;;  %vm462_vm3 = vcmask 64512   ;;  %v422_v54 = vshrl.u32 %v421_v53, 7 }
  0x96   : > { %1490 = vmatpush3.msra.mxu0 %v344_v1  ;;  %439 = vrot.lane.b32.xlu1 %v2152_v3, %s1887_s24  ;;  %v420_v11 = vld [vmem:[%s303_s30] sm:$0xff]  ;;  %s1891_s7 = smov 4   ;;  %s1892_s11 = smov 96   ;;  %v424_v55 = vand.u32 127, %v421_v53  ;;  %v1902_v57 = vmov -1e+09  }
  0x97   : > { %1491 = vmatprep.subr.mxu0 %v1885_v0  ;;  %s1893_s28 = smov 116   ;;  %s1894_s29 = smov 84   ;;  %vm1199_vm5 = vcmask 130048   ;;  %vm1201_vm6 = vcmask 195584  }
  0x98   : > { %1492 = vmatpush3.msra.mxu0 %v343_v2  ;;  %s1895_s27 = smov 108   ;;  %s1896_s16 = smov 8   ;;  %vm425_vm4 = vcmp.le.s32.totalorder %v424_v55, %v422_v54 }
  0x99   : > { %1493 = vmatprep.subr.mxu0 %v1885_v0  ;;  %s1897_s17 = smov 40   ;;  %s1898_s6 = smov 16   ;;  %v2201_v58 = vsel %vm425_vm4, 0.0, %v1902_v57 }
  0x9a   : > { %1494 = vmatpush3.msra.mxu0 %v342_v4  ;;  %s1899_s8 = smov 24   ;;  %s1900_s1 = smov 80  }
  0x9b   : > { %1495 = vmatprep.subr.mxu0 %v1885_v0  ;;  %s1901_s15 = smov 120   ;;  %s1903_s26 = smov 88  }
  0x9c   : > { %1496 = vmatpush3.msra.mxu0 %v341_v5  ;;  %s1904_s23 = smov 112   ;;  %s1905_s12 = smov 104  }
  0x9d   : > { %1498 = vmatmul.mubr.msk.f32.vlgmr.msra.gmra.mxu0 %vm345_vm1, %v340_v6  ;;  %1520 = vmatprep.subr.mxu0 %v1885_v0  ;;  %p2352_p0 = scmp.ne.s32.totalorder %s2339_s14, 0 }
  0x9e   : > { %1522 = vmatprep.mubr.msk.f32.mxu0 %vm1886_vm0, %v1885_v0 }
 0x108   : > { %v440_v15 = vpop.permute.xlu1 %439 }
 0x15d   : > { %v2162_v7 = vpop.f32.mrf.mxu0 }
 0x15e   : > { %v427_v8 = vsub.f32 0.0, %v2162_v7  ;;  %v442_v16 = vmul.f32 %v440_v15, %v2162_v7  ;;  %v456_v23 = vmul.f32 %v2152_v3, %v2162_v7 }
 0x15f   : > { %v1499_v9 = vpop.f32.mrf.mxu0 }
 0x160   : > { %429 = vrot.lane.b32.xlu0 %v427_v8, %s1888_s13 }
 0x164   : > { %433 = vrot.lane.b32.xlu0 %v2162_v7, %s1889_s10 }
 0x168   : > { %449 = vrot.lane.b32.xlu0 %v427_v8, %s1890_s21 }
 0x1d2   : > { %v430_v10 = vpop.permute.xlu0 %429 }
 0x1d6   : > { %v434_v12 = vpop.permute.xlu0 %433 }
 0x1d7   : > { %v437_v13 = vsel %vm436_vm2, %v430_v10, %v434_v12 }
 0x1d8   : > { %v443_v14 = vmul.f32 %v437_v13, %v420_v11 }
 0x1da   : > { %445 = vrot.lane.b32.xlu1 %v443_v14, %s1887_s24  ;;  %v450_v20 = vpop.permute.xlu0 %449  ;;  %s1906_s24 = smov 72  }
 0x1de   : > { %452 = vrot.lane.b32.xlu1 %v2162_v7, %s1891_s7 }
 0x24c   : > { %v446_v17 = vpop.permute.xlu1 %445 }
 0x24d   : > { %v448_v18 = vadd.f32 %v446_v17, %v442_v16 }
 0x24f   : > { %460 = vrot.lane.b32.xlu0 %v448_v18, %s1892_s11 }
 0x250   : > { %v453_v19 = vpop.permute.xlu1 %452 }
 0x251   : > { %v455_v21 = vsel %vm436_vm2, %v450_v20, %v453_v19 }
 0x252   : > { %v457_v22 = vmul.f32 %v455_v21, %v420_v11 }
 0x253   : > { %627 = vrot.lane.b32.xlu0 %v427_v8, %s1893_s28 }
 0x254   : > { %v458_v25 = vadd.f32 %v457_v22, %v456_v23 }
 0x257   : > { %630 = vrot.lane.b32.xlu0 %v2162_v7, %s1890_s21 }
 0x25b   : > { %805 = vrot.lane.b32.xlu0 %v427_v8, %s1894_s29 }
 0x25f   : > { %808 = vrot.lane.b32.xlu0 %v2162_v7, %s1888_s13  ;;  %s1460_s13 = sshll.u32 %s1959_s22, 7  ;;  %s1907_s22 = smov [#allocation11]  }
 0x260   : > { %s2266_s11 = scalar_lea.hbm %s2315_s5, %s1460_s13 }
 0x263   : > { %822 = vrot.lane.b32.xlu0 %v427_v8, %s1895_s27 }
 0x267   : > { %825 = vrot.lane.b32.xlu0 %v2162_v7, %s1893_s28  ;;  %s1282_s28 = scalar_lea.sflag [#allocation4], %s2125_s0 }
 0x26b   : > { %1008 = vrot.lane.b32.xlu0 %v427_v8, %s1889_s10  ;;  %s339_s10 = scalar_lea.vmem [#allocation11], %s2128_s9  ;;  %s1808_s9 = sshll.u32 %s1907_s22, 4  ;;  %s1809_s9 = int_to_ptr.vmem [resolvable:$false] %s1808_s9 }
 0x26c   : > { %s1295_s21 = sshll.u32 %s339_s10, 4  ;;  %s2268_s21 = int_to_ptr.vmem [resolvable:$true] %s1295_s21 }
 0x26d   : > { %s1804_s29 = scalar_lea.vmem %s2268_s21, 128  ;;  %p1811_p2 = scmp.lt.s32.totalorder %s2268_s21, %s1809_s9 }
 0x26e   : > { %p1805_p7 = scmp.ne.s32.totalorder %s2268_s21, %s1804_s29 }
 0x26f   : > { %1011 = vrot.lane.b32.xlu0 %v2162_v7, %s1895_s27  ;;  %s1810_s27 = scalar_lea.vmem %s1809_s9, 256 }
 0x270   : > { %p1806_p3 = pnand %p1805_p7, %p2352_p0  ;;  %p1812_p4 = scmp.lt.s32.totalorder %s1810_s27, %s1804_s29 }
 0x272   : > { %p1807_p5 = pneg %p1806_p3  ;;  %p1813_p8 = por %p1812_p4, %p1811_p2 }
 0x273   : > { %634 = vrot.lane.b32.xlu0 %v2152_v3, %s1896_s16 }
 0x274   : > { %p1814_p11 = pnand %p1813_p8, %p1807_p5 }
 0x2c1   : > { %v2179_v24 = vpop.permute.xlu0 %460 }
 0x2c2   : > { %1501 = vmatpush3.xpose.msk.msra.mxu1 %vm462_vm3, %v2179_v24 }
 0x2c3   : > { %1505 = vmatprep.subr.mxu1 %v1885_v0 }
 0x2c5   : > { %1503 = vmatmul.mubr.msk.f32.vlgmr.msra.gmra.mxu1 %vm462_vm3, %v458_v25  ;;  %v628_v26 = vpop.permute.xlu0 %627 }
 0x2c6   : > { %1507 = vmatprep.mubr.msk.f32.mxu1 %vm1886_vm0, %v1885_v0 }
 0x2c9   : > { %v631_v27 = vpop.permute.xlu0 %630 }
 0x2ca   : > { %v633_v28 = vsel %vm436_vm2, %v628_v26, %v631_v27 }
 0x2cb   : > { %v638_v29 = vmul.f32 %v633_v28, %v420_v11 }
 0x2cd   : > { %640 = vrot.lane.b32.xlu0 %v638_v29, %s1896_s16  ;;  %v806_v30 = vpop.permute.xlu0 %805 }
 0x2d1   : > { %v809_v31 = vpop.permute.xlu0 %808 }
 0x2d2   : > { %v811_v32 = vsel %vm436_vm2, %v806_v30, %v809_v31 }
 0x2d3   : > { %v816_v33 = vmul.f32 %v811_v32, %v420_v11 }
 0x2d5   : > { %818 = vrot.lane.b32.xlu0 %v816_v33, %s1897_s17  ;;  %v823_v34 = vpop.permute.xlu0 %822 }
 0x2d9   : > { %829 = vrot.lane.b32.xlu0 %v2152_v3, %s1898_s6  ;;  %v826_v35 = vpop.permute.xlu0 %825 }
 0x2da   : > { %v828_v36 = vsel %vm436_vm2, %v823_v34, %v826_v35 }
 0x2db   : > { %v833_v37 = vmul.f32 %v828_v36, %v420_v11 }
 0x2dd   : > { %835 = vrot.lane.b32.xlu0 %v833_v37, %s1898_s6  ;;  %v1009_v38 = vpop.permute.xlu0 %1008 }
 0x2e1   : > { %v1012_v39 = vpop.permute.xlu0 %1011 }
 0x2e2   : > { %v1014_v40 = vsel %vm436_vm2, %v1009_v38, %v1012_v39 }
 0x2e3   : > { %v1019_v41 = vmul.f32 %v1014_v40, %v420_v11 }
 0x2e5   : > { %1021 = vrot.lane.b32.xlu0 %v1019_v41, %s1899_s8  ;;  %v635_v42 = vpop.permute.xlu0 %634 }
 0x2e6   : > { %v637_v43 = vmul.f32 %v635_v42, %v2162_v7 }
 0x2e9   : > { %551 = vrot.lane.b32.xlu0 %v2162_v7, %s1900_s1 }
 0x33f   : > { %v641_v44 = vpop.permute.xlu0 %640 }
 0x340   : > { %v643_v45 = vadd.f32 %v641_v44, %v637_v43 }
 0x342   : > { %645 = vrot.lane.b32.xlu0 %v643_v45, %s1901_s15 }
 0x347   : > { %v819_v46 = vpop.permute.xlu0 %818 }
 0x34b   : > { %v830_v47 = vpop.permute.xlu0 %829 }
 0x34c   : > { %v832_v48 = vmul.f32 %v830_v47, %v2162_v7 }
 0x34f   : > { %v836_v49 = vpop.permute.xlu0 %835 }
 0x350   : > { %v838_v50 = vadd.f32 %v836_v49, %v832_v48 }
 0x357   : > { %v1022_v51 = vpop.permute.xlu0 %1021 }
 0x35b   : > { %v552_v52 = vpop.permute.xlu0 %551 }
 0x35c   : > { %1506 = vmatpush3.msra.mxu1 %v552_v52 }
 0x35d   : > { %1510 = vmatprep.subr.mxu1 %v1885_v0 }
 0x385   : > { %v534_v56 = vpop.f32.mrf.mxu1 }
 0x386   : > { %v538_v59 = vmul.f32 0.35355338, %v534_v56 }
 0x387   : > { %v1504_v60 = vpop.f32.mrf.mxu1 }
 0x388   : > { %v539_v61 = vadd.f32 %v538_v59, %v2201_v58  ;;  %v1206_v60 = vld [vmem:[#allocation7 + $0x18] sm:$0xff] }
 0x38a   : > { %v540_v62 = vsel %vm462_vm3, %v539_v61, -inf }
 0x38b   : > { %541 = vmax.xlane.f32.xlu1 %v540_v62  ;;  %v1204_v62 = vld [vmem:[#allocation7 + $0x8] sm:$0xff] }
 0x39c   : > { %812 = vrot.lane.b32.xlu1 %v2152_v3, %s1897_s17 }
 0x3a0   : > { %1015 = vrot.lane.b32.xlu1 %v2152_v3, %s1899_s8 }
 0x3b4   : > { %v646_v12 = vpop.permute.xlu0 %645 }
 0x414   : > { %v542_v63 = vpop.xlane.xlu1 %541 }
 0x415   : > { %v543_v1 = vsub.f32 %v539_v61, %v542_v63  ;;  %v1205_v61 = vld [vmem:[#allocation7 + $0x10] sm:$0xff]  ;;  %v1203_v63 = vld [vmem:[#allocation7] sm:$0xff] }
 0x417   : > { %v544_v2 = vmul.f32 1.442695, %v543_v1 }
 0x418   : > { %v813_v4 = vpop.permute.xlu1 %812 }
 0x419   : > { %1652 = vpow2.f32 %v544_v2  ;;  %v815_v5 = vmul.f32 %v813_v4, %v2162_v7 }
 0x41b   : > { %v821_v6 = vadd.f32 %v819_v46, %v815_v5 }
 0x41c   : > { %v1016_v8 = vpop.permute.xlu1 %1015 }
 0x41d   : > { %843 = vrot.lane.b32.xlu0 %v821_v6, %s1903_s26  ;;  %v1018_v9 = vmul.f32 %v1016_v8, %v2162_v7 }
 0x41f   : > { %v1024_v10 = vadd.f32 %v1022_v51, %v1018_v9 }
 0x421   : > { %840 = vrot.lane.b32.xlu0 %v838_v50, %s1904_s23 }
 0x425   : > { %1026 = vrot.lane.b32.xlu0 %v1024_v10, %s1905_s12 }
 0x426   : > { %v1653_v11 = vpop.eup %1652 }
 0x427   : > { %v546_v3 = vsel %vm462_vm3, %v1653_v11, 0.0 }
 0x428   : > { %547 = vadd.xlane.f32.xlu1 %v546_v3 }
 0x48f   : > { %v844_v13 = vpop.permute.xlu0 %843 }
 0x490   : > { %1521 = vmatpush3.xpose.msk.msra.mxu0 %vm462_vm3, %v844_v13 }
 0x491   : > { %1530 = vmatprep.subr.mxu0 %v1885_v0 }
 0x493   : > { %v841_v14 = vpop.permute.xlu0 %840 }
 0x494   : > { %1523 = vmatmul.mubr.msk.f32.vlgmr.msra.gmra.mxu0 %vm462_vm3, %v841_v14 }
 0x495   : > { %1531 = vmatpush3.xpose.msk.msra.mxu0 %vm462_vm3, %v844_v13  ;;  %1532 = vmatprep.mubr.msk.f32.mxu0 %vm1886_vm0, %v1885_v0 }
 0x496   : > { %1540 = vmatprep.subr.mxu0 %v1885_v0 }
 0x497   : > { %v1027_v15 = vpop.permute.xlu0 %1026 }
 0x498   : > { %1533 = vmatmul.mubr.msk.f32.vlgmr.msra.gmra.mxu0 %vm462_vm3, %v1027_v15 }
 0x499   : > { %1548 = vmatprep.mubr.msk.f32.mxu0 %vm1886_vm0, %v1885_v0  ;;  %1541 = vmatpush3.msra.mxu0 %v1206_v60 }
 0x49a   : > { %1542 = vmatprep.subr.mxu0 %v1885_v0 }
 0x49b   : > { %1543 = vmatpush3.msra.mxu0 %v1205_v61 }
 0x49c   : > { %1544 = vmatprep.subr.mxu0 %v1885_v0 }
 0x49d   : > { %1545 = vmatpush3.msra.mxu0 %v1204_v62 }
 0x49e   : > { %1546 = vmatprep.subr.mxu0 %v1885_v0 }
 0x49f   : > { %1547 = vmatpush3.msra.mxu0 %v1203_v63 }
 0x4b1   : > { %v548_v16 = vpop.xlane.xlu1 %547 }
 0x4b2   : > { %1654 = vrcp.f32 %v548_v16 }
 0x4bf   : > { %v1655_v17 = vpop.eup %1654 }
 0x4c0   : > { %v550_v18 = vmul.f32 %v1655_v17, %v1653_v11 }
 0x4c2   : > { %1508 = vmatmul.mubr.msk.f32.vlgmr.msra.gmra.mxu1 %vm462_vm3, %v550_v18 }
 0x4c3   : > { %1511 = vmatpush3.xpose.msk.msra.mxu1 %vm462_vm3, %v2179_v24  ;;  %1512 = vmatprep.mubr.msk.f32.mxu1 %vm1886_vm0, %v1885_v0 }
 0x4c4   : > { %1515 = vmatprep.subr.mxu1 %v1885_v0 }
 0x4c6   : > { %1513 = vmatmul.mubr.msk.f32.vlgmr.msra.gmra.mxu1 %vm462_vm3, %v646_v12 }
 0x4c7   : > { %1516 = vmatpush3.msra.mxu1 %v552_v52  ;;  %1517 = vmatprep.mubr.msk.f32.mxu1 %vm1886_vm0, %v1885_v0 }
 0x4c8   : > { %1525 = vmatprep.subr.mxu1 %v1885_v0 }
 0x554   : > { %v915_v19 = vpop.f32.mrf.mxu0 }
 0x555   : > { %v919_v20 = vmul.f32 0.35355338, %v915_v19 }
 0x556   : > { %v1524_v21 = vpop.f32.mrf.mxu0 }
 0x557   : > { %v920_v22 = vadd.f32 %v919_v20, %v2201_v58 }
 0x558   : > { %v1096_v23 = vpop.f32.mrf.mxu0 }
 0x559   : > { %v1100_v24 = vmul.f32 0.35355338, %v1096_v23  ;;  %v921_v25 = vsel %vm462_vm3, %v920_v22, -inf }
 0x55a   : > { %922 = vmax.xlane.f32.xlu1 %v921_v25  ;;  %v1534_v26 = vpop.f32.mrf.mxu0 }
 0x55b   : > { %v1101_v27 = vadd.f32 %v1100_v24, %v2201_v58 }
 0x55d   : > { %v1102_v28 = vsel %vm462_vm3, %v1101_v27, -inf }
 0x55e   : > { %1103 = vmax.xlane.f32.xlu1 %v1102_v28 }
 0x582   : > { %v2236_v29 = vpop.f32.mrf.mxu1 }
 0x584   : > { %v1509_v30 = vpop.f32.mrf.mxu1 }
 0x586   : > { %v715_v31 = vpop.f32.mrf.mxu1 }
 0x587   : > { %v719_v32 = vmul.f32 0.35355338, %v715_v31 }
 0x588   : > { %v1514_v33 = vpop.f32.mrf.mxu1 }
 0x589   : > { %v720_v34 = vadd.f32 %v719_v32, %v2201_v58 }
 0x58b   : > { %v721_v35 = vsel %vm462_vm3, %v720_v34, -inf }
 0x58c   : > { %722 = vmax.xlane.f32.xlu0 %v721_v35 }
 0x5a2   : > { %932 = vrot.lane.b32.xlu0 %v2162_v7, %s1906_s24 }
 0x5e3   : > { %v923_v36 = vpop.xlane.xlu1 %922 }
 0x5e4   : > { %v924_v37 = vsub.f32 %v920_v22, %v923_v36 }
 0x5e6   : > { %v925_v41 = vmul.f32 1.442695, %v924_v37 }
 0x5e7   : > { %v1104_v38 = vpop.xlane.xlu1 %1103 }
 0x5e8   : > { %v1105_v42 = vsub.f32 %v1101_v27, %v1104_v38 }
 0x5ea   : > { %v1106_v44 = vmul.f32 1.442695, %v1105_v42 }
 0x615   : > { %v723_v39 = vpop.xlane.xlu0 %722 }
 0x616   : > { %v724_v40 = vsub.f32 %v720_v34, %v723_v39 }
 0x618   : > { %v725_v43 = vmul.f32 1.442695, %v724_v40 }
 0x619   : > { %v933_v55 = vpop.permute.xlu0 %932 }
 0x61a   : > { %1656 = vpow2.f32 %v725_v43 }
 0x61b   : > { %1658 = vpow2.f32 %v925_v41 }
 0x61c   : > { %1660 = vpow2.f32 %v1106_v44 }
 0x627   : > { %v1657_v45 = vpop.eup %1656 }
 0x628   : > { %v727_v46 = vsel %vm462_vm3, %v1657_v45, 0.0  ;;  %v1659_v47 = vpop.eup %1658 }
 0x629   : > { %728 = vadd.xlane.f32.xlu1 %v727_v46  ;;  %v927_v48 = vsel %vm462_vm3, %v1659_v47, 0.0  ;;  %v1661_v7 = vpop.eup %1660 }
 0x62a   : > { %v1108_v49 = vsel %vm462_vm3, %v1661_v7, 0.0 }
 0x62d   : > { %928 = vadd.xlane.f32.xlu1 %v927_v48 }
 0x631   : > { %1109 = vadd.xlane.f32.xlu1 %v1108_v49 }
 0x6b2   : > { %v729_v50 = vpop.xlane.xlu1 %728 }
 0x6b3   : > { %1662 = vrcp.f32 %v729_v50 }
 0x6b6   : > { %v929_v51 = vpop.xlane.xlu1 %928 }
 0x6b7   : > { %1664 = vrcp.f32 %v929_v51 }
 0x6ba   : > { %v1110_v52 = vpop.xlane.xlu1 %1109 }
 0x6bb   : > { %1666 = vrcp.f32 %v1110_v52 }
 0x6c0   : > { %v1663_v53 = vpop.eup %1662 }
 0x6c1   : > { %v731_v54 = vmul.f32 %v1663_v53, %v1657_v45 }
 0x6c3   : > { %1518 = vmatmul.mubr.msk.f32.vlgmr.msra.gmra.mxu1 %vm462_vm3, %v731_v54 }
 0x6c4   : > { %v1665_v56 = vpop.eup %1664  ;;  %1526 = vmatpush3.msra.mxu1 %v933_v55  ;;  %1527 = vmatprep.mubr.msk.f32.mxu1 %vm1886_vm0, %v1885_v0 }
 0x6c5   : > { %1535 = vmatprep.subr.mxu1 %v1885_v0  ;;  %v931_v57 = vmul.f32 %v1665_v56, %v1659_v47 }
 0x6c7   : > { %1528 = vmatmul.mubr.msk.f32.vlgmr.msra.gmra.mxu1 %vm462_vm3, %v931_v57 }
 0x6c8   : > { %v1667_v58 = vpop.eup %1666  ;;  %1536 = vmatpush3.msra.mxu1 %v933_v55  ;;  %1537 = vmatprep.mubr.msk.f32.mxu1 %vm1886_vm0, %v1885_v0 }
 0x6c9   : > { %v1112_v59 = vmul.f32 %v1667_v58, %v1661_v7 }
 0x6cb   : > { %1538 = vmatmul.mubr.msk.f32.vlgmr.msra.gmra.mxu1 %vm462_vm3, %v1112_v59 }
 0x783   : > { %v801_v1 = vpop.f32.mrf.mxu1 }
 0x784   : > { %1187 = vrot.lane.b32.xlu1 %v801_v1, %s1896_s16 }
 0x785   : > { %v1519_v2 = vpop.f32.mrf.mxu1 }
 0x787   : > { %v1004_v4 = vpop.f32.mrf.mxu1 }
 0x788   : > { %1191 = vrot.lane.b32.xlu1 %v1004_v4, %s1898_s6 }
 0x789   : > { %v1529_v5 = vpop.f32.mrf.mxu1 }
 0x78b   : > { %v1182_v6 = vpop.f32.mrf.mxu1 }
 0x78c   : > { %1195 = vrot.lane.b32.xlu0 %v1182_v6, %s1899_s8 }
 0x78d   : > { %v1539_v8 = vpop.f32.mrf.mxu1 }
 0x7f6   : > { %v1188_v9 = vpop.permute.xlu1 %1187 }
 0x7f7   : > { %v1198_v10 = vsel %vm462_vm3, %v2236_v29, %v1188_v9 }
 0x7fa   : > { %v1192_v0 = vpop.permute.xlu1 %1191 }
 0x7fb   : > { %v1200_v11 = vsel %vm1199_vm5, %v1198_v10, %v1192_v0 }
 0x7fe   : > { %v1196_v3 = vpop.permute.xlu0 %1195 }
 0x7ff   : > { %v1202_v12 = vsel %vm1201_vm6, %v1200_v11, %v1196_v3 }
 0x800   : > { %1549 = vmatmul.mubr.msk.f32.vlgmr.msra.gmra.mxu0 %vm345_vm1, %v1202_v12 }
 0x8c0   : > { %v1276_v13 = vpop.f32.mrf.mxu0 }
 0x8c1   : > { %1280 = vst.msk [vmem:[%s339_s10] sm:$0xff] %vm345_vm1, %v1276_v13 }
 0x8c2   : > { %v1550_v14 = vpop.f32.mrf.mxu0 }
 0x8c3   : > { %1817 = shalt.err (!%p1814_p11)
}
 0x8c4   : > { %s1818_s16 = scalar_lea.hbm %s2266_s11, 128  ;;  %s1822_s6 = scalar_lea.hbm %s2315_s5, 256 }
 0x8c5   : > { %p1819_p13 = scmp.ne.s32.totalorder %s2266_s11, %s1818_s16  ;;  %p1823_p10 = scmp.lt.s32.totalorder %s2266_s11, %s2315_s5 }
 0x8c6   : > { %p1824_p9 = scmp.lt.s32.totalorder %s1822_s6, %s1818_s16 }
 0x8c7   : > { %p1820_p1 = pnand %p1819_p13, %p2352_p0 }
 0x8c8   : > { %p1825_p12 = por %p1824_p9, %p1823_p10 }
 0x8c9   : > { %p1821_p6 = pneg %p1820_p1 }
 0x8cb   : > { %p1826_p7 = pnand %p1825_p12, %p1821_p6 }
 0x8cd   : > { %1829 = shalt.err (!%p1826_p7)
}
 0x8ce   : > { %1565 = dma.vmem_to_hbm [thread:$0]  (%p2352_p0), %s2268_s21, 128, %s2266_s11, %s1282_s28  }
 0x8cf PF: > { %s2353_s15 = sld [smem:[#allocation16_spill]]  ;;  %s1307_s26 = sand.u32 1, %s1864_s18  }
 0x8d0   : > { %p2354_p3 = scmp.ne.s32.totalorder %s2333_s25, 0  ;;  %s1308_s23 = scalar_lea.sflag [#allocation4], %s1307_s26 }
 0x8d5   : > { %p2355_p5 = scmp.ge.s32.totalorder %s2353_s15, 2 }
 0x8d7   : > { %p1585_p2 = pnand %p2355_p5, %p2354_p3 }
 0x8d9   : > { %p1586_p4 = pneg %p1585_p2 }
 0x8db   : > { %1859 = dma.done.wait (%p1586_p4), %s1308_s23, 128  }
 0x8dc   : > { %1861 = vsyncadd (%p1586_p4), %s1308_s23, 4294967168  ;;  %s2356_s21 = sld [smem:[#allocation17_spill]]  ;;  %s2358_s18 = smov %s1868_s19 }
 0x8dd   : > { %s2357_s12 = sld [smem:[#allocation18_spill]]  ;;  %s2359_s19 = smov %s1872_s20 }
 0x8e2   : > { %p22_p8 = scmp.ge.s32.totalorder %s2356_s21, 4  }
 0x8e3   : > { %s2360_s20 = smov %s2357_s12 }
 0x8e4   :  { %24 = sbr.rel (!%p22_p8) target bundleno = 11 (0xb), region = 117 }
 0x8e9   :  { %1313 = vsyncpa [#allocation3], 1 }
 0x8ea   :  { %1315 = vsyncpa [#allocation3 + $0x1], 1 }
 0x8eb   :  { %1316 = vsyncpa [#allocation6], 1 }
 0x8ec   :  { %1317 = vsyncpa [#allocation9], 1 }
 0x8ed   :  { %1319 = vsyncpa [#allocation9 + $0x1], 1 }
 0x8ee   :  { %1320 = vsyncpa [#allocation4], 1 }
 0x8ef   :  { %1322 = vsyncpa [#allocation4 + $0x1], 1 }

</bundles_post_ra>
